<compile_context>
chip_gen: v7x
topology: tpu7x:2x2x1
jax: 0.10.0
libtpu: 0.0.40
codegen_flags: <defaults>
</compile_context>

<pallas_src>
import functools

import jax
import jax.numpy as jnp
from jax import lax
from jax.experimental import pallas as pl
from jax.experimental.pallas import tpu as pltpu


def _double_conv_kernel(mask_ref, x_ref, w1_ref, w2_ref, bias_ref, out_ref,
                        taps_ref, *, H, W, Cout, Cin_pad, Cout_pad):
    # mask_ref : (9, H*W) f32      per-tap SAME-padding validity (1.0 / 0.0)
    # x_ref    : (BT, Cin_pad, H*W) f32   BT images, channels on sublanes (padded)
    # w1_ref   : (Cout_pad, 9*Cin_pad)  bf16  BN1-scale-folded im2col weights
    # w2_ref   : (Cout,     9*Cout_pad) bf16  BN2-scale-folded im2col weights
    # bias_ref : (2*Cout_pad, 1) f32    rows [0:Cout_pad]=bias1 (padded 0),
    #                                   rows [Cout_pad:]=bias2
    # out_ref  : (BT, Cout, H*W) f32    lane-dense output
    # taps_ref : (9*max(Cin_pad,Cout_pad), H*W) bf16 im2col scratch (reused)
    BT = x_ref.shape[0]
    HW = H * W

    # (lane-roll shift, needs-mask) per 3x3 tap; tap[p] = src[p + dy*W + dx] when
    # the neighbour (h+dy, w+dx) is inside the image, else 0 (== SAME padding).
    taps_meta = []
    for dy in (-1, 0, 1):
        for dx in (-1, 0, 1):
            shift = (-(dy * W + dx)) % HW
            taps_meta.append((shift, not (dy == 0 and dx == 0)))

    # Hoisted constant loads (once per grid step).
    mask_rows = [mask_ref[t:t + 1, :] for t in range(9)]      # each (1, HW) f32
    b1 = bias_ref[0:Cout_pad, :]                              # (Cout_pad, 1)
    b2 = bias_ref[Cout_pad:Cout_pad + Cout, :]                # (Cout, 1)

    def im2col_into(src, c_pad):
        # Fused roll -> mask-multiply (f32) -> bf16 cast -> aligned full-slot store.
        for t, (shift, needs_mask) in enumerate(taps_meta):
            tap = src if shift == 0 else pltpu.roll(src, shift, axis=1)
            if needs_mask:
                tap = tap * mask_rows[t]
            taps_ref[t * c_pad:(t + 1) * c_pad, :] = tap.astype(jnp.bfloat16)

    for b in range(BT):  # static unroll over the images of this block
        # ---- conv1: single im2col matmul (K = 9*Cin_pad, N = H*W lanes) ----
        im2col_into(x_ref[b], Cin_pad)
        acc1 = jnp.dot(w1_ref[...], taps_ref[0:9 * Cin_pad, :],
                       preferred_element_type=jnp.float32)     # (Cout_pad, HW)
        # BN1 scale already folded into w1; padded rows: relu(0 + 0) = 0.
        y = jnp.maximum(acc1 + b1, 0.0)                        # (Cout_pad, HW) f32

        # ---- conv2: single im2col matmul (K = 9*Cout_pad) ----
        im2col_into(y, Cout_pad)
        acc2 = jnp.dot(w2_ref[...], taps_ref[0:9 * Cout_pad, :],
                       preferred_element_type=jnp.float32)     # (Cout, HW)
        out_ref[b] = jnp.maximum(acc2 + b2, 0.0).astype(out_ref.dtype)


def double_conv_forward(x_nchw, w1_hwio, w2_hwio, scale1, bias1, scale2, bias2,
                        batch_tile=None):
    """x_nchw: (N, Cin, H, W) f32; conv weights HWIO; returns (N, Cout, H, W) f32."""
    N, Cin, H, W = x_nchw.shape
    Cout = w1_hwio.shape[-1]
    HW = H * W

    # bf16 sublane tile = 16 rows -> pad each tap's channel slot to 16.
    SUB = 16
    Cin_pad = -(-Cin // SUB) * SUB
    Cout_pad = -(-Cout // SUB) * SUB
    C_pad_max = max(Cin_pad, Cout_pad)

    # Batch tiling: maximize work per grid step while keeping >= 2 parallel steps
    # (v7x has 2 TensorCores; irrelevant but harmless on v5e/v6e).
    if batch_tile is None:
        divisors = [d for d in range(1, N + 1) if N % d == 0 and N // d >= 2]
        bt = max(divisors) if divisors else N
    else:
        bt = batch_tile
    assert N % bt == 0

    # Fold BN scales into the conv weights (eval-mode BN), reorder to im2col
    # (co, (ky*3+kx)*C_pad + ci) with zero-padded K columns, cast to bf16.
    w1f = (w1_hwio.astype(jnp.float32) * scale1.reshape(1, 1, 1, Cout))
    w1m = jnp.transpose(w1f, (3, 0, 1, 2))                         # (Cout,3,3,Cin)
    w1m = jnp.pad(w1m, ((0, Cout_pad - Cout), (0, 0), (0, 0), (0, Cin_pad - Cin)))
    w1m = w1m.reshape(Cout_pad, 9 * Cin_pad).astype(jnp.bfloat16)

    w2f = (w2_hwio.astype(jnp.float32) * scale2.reshape(1, 1, 1, Cout))
    w2m = jnp.transpose(w2f, (3, 0, 1, 2))                         # (Cout,3,3,Cout)
    w2m = jnp.pad(w2m, ((0, 0), (0, 0), (0, 0), (0, Cout_pad - Cout)))
    w2m = w2m.reshape(Cout, 9 * Cout_pad).astype(jnp.bfloat16)

    # Merged biases (f32): rows [0:Cout_pad]=bias1 (padded rows zero so conv1's
    # padded output rows stay exactly zero), rows [Cout_pad:]=bias2.
    b1p = jnp.pad(bias1.astype(jnp.float32), (0, Cout_pad - Cout))
    b2p = jnp.pad(bias2.astype(jnp.float32), (0, Cout_pad - Cout))
    bias = jnp.concatenate([b1p, b2p], axis=0).reshape(2 * Cout_pad, 1)

    # SAME-padding validity masks for the 9 taps, lane-dense (9, H*W) f32.
    pos = jnp.arange(HW, dtype=jnp.int32)
    row, col = pos // W, pos % W
    masks = []
    for dy in (-1, 0, 1):
        for dx in (-1, 0, 1):
            m = ((row + dy >= 0) & (row + dy < H) &
                 (col + dx >= 0) & (col + dx < W))
            masks.append(m)
    masks = jnp.stack(masks, axis=0).astype(jnp.float32)           # (9, HW)

    # NCHW -> (N, C, H*W) (free reshape); zero-pad channels to the bf16 sublane
    # tile so every im2col tap store is a full aligned tile (tiny one-time pad).
    x_flat = x_nchw.reshape(N, Cin, HW).astype(jnp.float32)
    x_flat = jnp.pad(x_flat, ((0, 0), (0, Cin_pad - Cin), (0, 0)))

    kernel = functools.partial(_double_conv_kernel, H=H, W=W, Cout=Cout,
                               Cin_pad=Cin_pad, Cout_pad=Cout_pad)

    out_flat = pl.pallas_call(
        kernel,
        out_shape=jax.ShapeDtypeStruct((N, Cout, HW), jnp.float32),
        grid_spec=pltpu.PrefetchScalarGridSpec(
            num_scalar_prefetch=0,
            grid=(N // bt,),
            in_specs=[
                pl.BlockSpec((9, HW), lambda n: (0, 0)),
                pl.BlockSpec((bt, Cin_pad, HW), lambda n: (n, 0, 0)),
                pl.BlockSpec((Cout_pad, 9 * Cin_pad), lambda n: (0, 0)),
                pl.BlockSpec((Cout, 9 * Cout_pad), lambda n: (0, 0)),
                pl.BlockSpec((2 * Cout_pad, 1), lambda n: (0, 0)),
            ],
            out_specs=pl.BlockSpec((bt, Cout, HW), lambda n: (n, 0, 0)),
            # Single bf16 im2col scratch reused by both convs and all bt images.
            scratch_shapes=[pltpu.VMEM((9 * C_pad_max, HW), jnp.bfloat16)],
        ),
        compiler_params=pltpu.CompilerParams(
            dimension_semantics=("parallel",)),
    )(masks, x_flat, w1m, w2m, bias)

    return out_flat.reshape(N, Cout, H, W)


def _fold_bn(gamma, beta, mean, var, eps=1e-5):
    scale = gamma / jnp.sqrt(var + eps)
    bias = beta - mean * scale
    return scale, bias


def _reference_forward(x_nchw, w1_scaled, b1, w2_scaled, b2):
    """Pure-JAX reference with matching numerics: BN scale folded into bf16
    weights, bf16 conv inputs, f32 accumulation, f32 bias + ReLU."""
    dn = ('NHWC', 'HWIO', 'NHWC')
    x = jnp.transpose(x_nchw, (0, 2, 3, 1)).astype(jnp.bfloat16)
    y = lax.conv_general_dilated(x, w1_scaled.astype(jnp.bfloat16), (1, 1), 'SAME',
                                 dimension_numbers=dn,
                                 preferred_element_type=jnp.float32)
    y = jnp.maximum(y + b1, 0.0)
    z = lax.conv_general_dilated(y.astype(jnp.bfloat16),
                                 w2_scaled.astype(jnp.bfloat16), (1, 1), 'SAME',
                                 dimension_numbers=dn,
                                 preferred_element_type=jnp.float32)
    z = jnp.maximum(z + b2, 0.0)
    return jnp.transpose(z, (0, 3, 1, 2))


if __name__ == "__main__":
    # Small shapes consistent with double_conv(in_ch=4, out_ch=8) on a 16x16 image.
    N, Cin, Cout, H, W = 2, 4, 8, 16, 16

    key = jax.random.PRNGKey(0)
    k = jax.random.split(key, 10)

    # Conv weights in HWIO layout (equivalent to PyTorch OIHW after transpose).
    w1 = 0.1 * jax.random.normal(k[0], (3, 3, Cin, Cout), jnp.float32)
    w2 = 0.1 * jax.random.normal(k[1], (3, 3, Cout, Cout), jnp.float32)

    # Deterministic, non-trivial BatchNorm parameters (eval-mode folding).
    gamma1 = 1.0 + 0.1 * jax.random.normal(k[2], (Cout,), jnp.float32)
    beta1 = 0.1 * jax.random.normal(k[3], (Cout,), jnp.float32)
    mean1 = 0.05 * jax.random.normal(k[4], (Cout,), jnp.float32)
    var1 = 1.0 + 0.1 * jnp.abs(jax.random.normal(k[5], (Cout,), jnp.float32))
    gamma2 = 1.0 + 0.1 * jax.random.normal(k[6], (Cout,), jnp.float32)
    beta2 = 0.1 * jax.random.normal(k[7], (Cout,), jnp.float32)
    mean2 = 0.05 * jax.random.normal(k[8], (Cout,), jnp.float32)
    var2 = 1.0 + 0.1 * jnp.abs(jax.random.normal(k[9], (Cout,), jnp.float32))

    s1, b1 = _fold_bn(gamma1, beta1, mean1, var1)
    s2, b2 = _fold_bn(gamma2, beta2, mean2, var2)

    x = jax.random.normal(jax.random.PRNGKey(42), (N, Cin, H, W), jnp.float32)

    out = double_conv_forward(x, w1, w2, s1, b1, s2, b2)
    out = jax.block_until_ready(out)

    ref = _reference_forward(x, w1 * s1.reshape(1, 1, 1, Cout), b1,
                             w2 * s2.reshape(1, 1, 1, Cout), b2)
    assert out.shape == (N, Cout, H, W)
    max_err = jnp.max(jnp.abs(out - ref))
    assert jnp.allclose(out, ref, rtol=1e-2, atol=1e-2), f"max err {max_err}"

    print("KERNEL_OK")
</pallas_src>

<mosaic_0001>
module attributes {stable_mosaic.version = 11 : i64} {
  func.func @_double_conv_kernel(%arg0: i32, %arg1: memref<9x256xf32, #tpu.memory_space<vmem>>, %arg2: memref<1x16x256xf32, #tpu.memory_space<vmem>>, %arg3: memref<16x144xbf16, #tpu.memory_space<vmem>>, %arg4: memref<8x144xbf16, #tpu.memory_space<vmem>>, %arg5: memref<32x1xf32, #tpu.memory_space<vmem>>, %arg6: memref<1x8x256xf32, #tpu.memory_space<vmem>>, %arg7: memref<144x256xbf16, #tpu.memory_space<vmem>>) attributes {dimension_semantics = [#tpu.dimension_semantics<parallel>], iteration_bounds = array<i64: 2>, scalar_prefetch = 0 : i64, scratch_operands = 1 : i64, tpu.core_type = #tpu.core_type<tc>, window_params = [{pipeline_mode = #tpu.pipeline_mode<synchronous>, transform_indices = @transform_0, window_bounds = array<i64: 9, 256>}, {transform_indices = @transform_1, window_bounds = array<i64: 1, 16, 256>}, {pipeline_mode = #tpu.pipeline_mode<synchronous>, transform_indices = @transform_2, window_bounds = array<i64: 16, 144>}, {pipeline_mode = #tpu.pipeline_mode<synchronous>, transform_indices = @transform_3, window_bounds = array<i64: 8, 144>}, {pipeline_mode = #tpu.pipeline_mode<synchronous>, transform_indices = @transform_4, window_bounds = array<i64: 32, 1>}, {transform_indices = @transform_5, window_bounds = array<i64: 1, 8, 256>}]} {
    %c0 = arith.constant 0 : index
    %c0_0 = arith.constant 0 : index
    %0 = vector.load %arg1[%c0, %c0_0] : memref<9x256xf32, #tpu.memory_space<vmem>>, vector<1x256xf32>
    %c1 = arith.constant 1 : index
    %c0_1 = arith.constant 0 : index
    %1 = vector.load %arg1[%c1, %c0_1] : memref<9x256xf32, #tpu.memory_space<vmem>>, vector<1x256xf32>
    %c2 = arith.constant 2 : index
    %c0_2 = arith.constant 0 : index
    %2 = vector.load %arg1[%c2, %c0_2] : memref<9x256xf32, #tpu.memory_space<vmem>>, vector<1x256xf32>
    %c3 = arith.constant 3 : index
    %c0_3 = arith.constant 0 : index
    %3 = vector.load %arg1[%c3, %c0_3] : memref<9x256xf32, #tpu.memory_space<vmem>>, vector<1x256xf32>
    %c5 = arith.constant 5 : index
    %c0_4 = arith.constant 0 : index
    %4 = vector.load %arg1[%c5, %c0_4] : memref<9x256xf32, #tpu.memory_space<vmem>>, vector<1x256xf32>
    %c6 = arith.constant 6 : index
    %c0_5 = arith.constant 0 : index
    %5 = vector.load %arg1[%c6, %c0_5] : memref<9x256xf32, #tpu.memory_space<vmem>>, vector<1x256xf32>
    %c7 = arith.constant 7 : index
    %c0_6 = arith.constant 0 : index
    %6 = vector.load %arg1[%c7, %c0_6] : memref<9x256xf32, #tpu.memory_space<vmem>>, vector<1x256xf32>
    %c8 = arith.constant 8 : index
    %c0_7 = arith.constant 0 : index
    %7 = vector.load %arg1[%c8, %c0_7] : memref<9x256xf32, #tpu.memory_space<vmem>>, vector<1x256xf32>
    %c0_8 = arith.constant 0 : index
    %c0_9 = arith.constant 0 : index
    %8 = vector.load %arg5[%c0_8, %c0_9] : memref<32x1xf32, #tpu.memory_space<vmem>>, vector<16x1xf32>
    %c16 = arith.constant 16 : index
    %c0_10 = arith.constant 0 : index
    %9 = vector.load %arg5[%c16, %c0_10] : memref<32x1xf32, #tpu.memory_space<vmem>>, vector<8x1xf32>
    %c0_11 = arith.constant 0 : index
    %c0_12 = arith.constant 0 : index
    %c0_13 = arith.constant 0 : index
    %10 = vector.load %arg2[%c0_11, %c0_12, %c0_13] : memref<1x16x256xf32, #tpu.memory_space<vmem>>, vector<1x16x256xf32>
    %11 = vector.shape_cast %10 : vector<1x16x256xf32> to vector<16x256xf32>
    %c17_i32 = arith.constant 17 : i32
    %12 = tpu.dynamic_rotate %11 by %c17_i32 dim 1 : vector<16x256xf32>, i32 -> vector<16x256xf32>
    %13 = vector.broadcast %0 : vector<1x256xf32> to vector<16x256xf32>
    %14 = arith.mulf %12, %13 : vector<16x256xf32>
    %15 = arith.truncf %14 : vector<16x256xf32> to vector<16x256xbf16>
    %c0_14 = arith.constant 0 : index
    %c0_15 = arith.constant 0 : index
    %16 = vector.load %arg7[%c0_14, %c0_15] : memref<144x256xbf16, #tpu.memory_space<vmem>>, vector<16x256xbf16>
    tpu.vector_store %arg7[%c0_14, %c0_15], %15 {strides = array<i32>} : memref<144x256xbf16, #tpu.memory_space<vmem>>, vector<16x256xbf16>,
    %c16_i32 = arith.constant 16 : i32
    %17 = tpu.dynamic_rotate %11 by %c16_i32 dim 1 : vector<16x256xf32>, i32 -> vector<16x256xf32>
    %18 = vector.broadcast %1 : vector<1x256xf32> to vector<16x256xf32>
    %19 = arith.mulf %17, %18 : vector<16x256xf32>
    %20 = arith.truncf %19 : vector<16x256xf32> to vector<16x256xbf16>
    %c16_16 = arith.constant 16 : index
    %c0_17 = arith.constant 0 : index
    %21 = vector.load %arg7[%c16_16, %c0_17] : memref<144x256xbf16, #tpu.memory_space<vmem>>, vector<16x256xbf16>
    tpu.vector_store %arg7[%c16_16, %c0_17], %20 {strides = array<i32>} : memref<144x256xbf16, #tpu.memory_space<vmem>>, vector<16x256xbf16>,
    %c15_i32 = arith.constant 15 : i32
    %22 = tpu.dynamic_rotate %11 by %c15_i32 dim 1 : vector<16x256xf32>, i32 -> vector<16x256xf32>
    %23 = vector.broadcast %2 : vector<1x256xf32> to vector<16x256xf32>
    %24 = arith.mulf %22, %23 : vector<16x256xf32>
    %25 = arith.truncf %24 : vector<16x256xf32> to vector<16x256xbf16>
    %c32 = arith.constant 32 : index
    %c0_18 = arith.constant 0 : index
    %26 = vector.load %arg7[%c32, %c0_18] : memref<144x256xbf16, #tpu.memory_space<vmem>>, vector<16x256xbf16>
    tpu.vector_store %arg7[%c32, %c0_18], %25 {strides = array<i32>} : memref<144x256xbf16, #tpu.memory_space<vmem>>, vector<16x256xbf16>,
    %c1_i32 = arith.constant 1 : i32
    %27 = tpu.dynamic_rotate %11 by %c1_i32 dim 1 : vector<16x256xf32>, i32 -> vector<16x256xf32>
    %28 = vector.broadcast %3 : vector<1x256xf32> to vector<16x256xf32>
    %29 = arith.mulf %27, %28 : vector<16x256xf32>
    %30 = arith.truncf %29 : vector<16x256xf32> to vector<16x256xbf16>
    %c48 = arith.constant 48 : index
    %c0_19 = arith.constant 0 : index
    %31 = vector.load %arg7[%c48, %c0_19] : memref<144x256xbf16, #tpu.memory_space<vmem>>, vector<16x256xbf16>
    tpu.vector_store %arg7[%c48, %c0_19], %30 {strides = array<i32>} : memref<144x256xbf16, #tpu.memory_space<vmem>>, vector<16x256xbf16>,
    %32 = arith.truncf %11 : vector<16x256xf32> to vector<16x256xbf16>
    %c64 = arith.constant 64 : index
    %c0_20 = arith.constant 0 : index
    %33 = vector.load %arg7[%c64, %c0_20] : memref<144x256xbf16, #tpu.memory_space<vmem>>, vector<16x256xbf16>
    tpu.vector_store %arg7[%c64, %c0_20], %32 {strides = array<i32>} : memref<144x256xbf16, #tpu.memory_space<vmem>>, vector<16x256xbf16>,
    %c255_i32 = arith.constant 255 : i32
    %34 = tpu.dynamic_rotate %11 by %c255_i32 dim 1 : vector<16x256xf32>, i32 -> vector<16x256xf32>
    %35 = vector.broadcast %4 : vector<1x256xf32> to vector<16x256xf32>
    %36 = arith.mulf %34, %35 : vector<16x256xf32>
    %37 = arith.truncf %36 : vector<16x256xf32> to vector<16x256xbf16>
    %c80 = arith.constant 80 : index
    %c0_21 = arith.constant 0 : index
    %38 = vector.load %arg7[%c80, %c0_21] : memref<144x256xbf16, #tpu.memory_space<vmem>>, vector<16x256xbf16>
    tpu.vector_store %arg7[%c80, %c0_21], %37 {strides = array<i32>} : memref<144x256xbf16, #tpu.memory_space<vmem>>, vector<16x256xbf16>,
    %c241_i32 = arith.constant 241 : i32
    %39 = tpu.dynamic_rotate %11 by %c241_i32 dim 1 : vector<16x256xf32>, i32 -> vector<16x256xf32>
    %40 = vector.broadcast %5 : vector<1x256xf32> to vector<16x256xf32>
    %41 = arith.mulf %39, %40 : vector<16x256xf32>
    %42 = arith.truncf %41 : vector<16x256xf32> to vector<16x256xbf16>
    %c96 = arith.constant 96 : index
    %c0_22 = arith.constant 0 : index
    %43 = vector.load %arg7[%c96, %c0_22] : memref<144x256xbf16, #tpu.memory_space<vmem>>, vector<16x256xbf16>
    tpu.vector_store %arg7[%c96, %c0_22], %42 {strides = array<i32>} : memref<144x256xbf16, #tpu.memory_space<vmem>>, vector<16x256xbf16>,
    %c240_i32 = arith.constant 240 : i32
    %44 = tpu.dynamic_rotate %11 by %c240_i32 dim 1 : vector<16x256xf32>, i32 -> vector<16x256xf32>
    %45 = vector.broadcast %6 : vector<1x256xf32> to vector<16x256xf32>
    %46 = arith.mulf %44, %45 : vector<16x256xf32>
    %47 = arith.truncf %46 : vector<16x256xf32> to vector<16x256xbf16>
    %c112 = arith.constant 112 : index
    %c0_23 = arith.constant 0 : index
    %48 = vector.load %arg7[%c112, %c0_23] : memref<144x256xbf16, #tpu.memory_space<vmem>>, vector<16x256xbf16>
    tpu.vector_store %arg7[%c112, %c0_23], %47 {strides = array<i32>} : memref<144x256xbf16, #tpu.memory_space<vmem>>, vector<16x256xbf16>,
    %c239_i32 = arith.constant 239 : i32
    %49 = tpu.dynamic_rotate %11 by %c239_i32 dim 1 : vector<16x256xf32>, i32 -> vector<16x256xf32>
    %50 = vector.broadcast %7 : vector<1x256xf32> to vector<16x256xf32>
    %51 = arith.mulf %49, %50 : vector<16x256xf32>
    %52 = arith.truncf %51 : vector<16x256xf32> to vector<16x256xbf16>
    %c128 = arith.constant 128 : index
    %c0_24 = arith.constant 0 : index
    %53 = vector.load %arg7[%c128, %c0_24] : memref<144x256xbf16, #tpu.memory_space<vmem>>, vector<16x256xbf16>
    tpu.vector_store %arg7[%c128, %c0_24], %52 {strides = array<i32>} : memref<144x256xbf16, #tpu.memory_space<vmem>>, vector<16x256xbf16>,
    %c0_25 = arith.constant 0 : index
    %c0_26 = arith.constant 0 : index
    %54 = vector.load %arg3[%c0_25, %c0_26] : memref<16x144xbf16, #tpu.memory_space<vmem>>, vector<16x144xbf16>
    %c0_27 = arith.constant 0 : index
    %c0_28 = arith.constant 0 : index
    %55 = vector.load %arg7[%c0_27, %c0_28] : memref<144x256xbf16, #tpu.memory_space<vmem>>, vector<144x256xbf16>
    %cst = arith.constant dense<0.000000e+00> : vector<16x256xf32>
    %56 = tpu.matmul %54, %55, %cst {dimension_numbers = #tpu.dot_dimension_numbers<[1], [0], [0], [1], [0, 0, 1, 1], [], []>} : vector<16x144xbf16>, vector<144x256xbf16>, vector<16x256xf32> -> vector<16x256xf32>
    %57 = vector.broadcast %8 : vector<16x1xf32> to vector<16x256xf32>
    %58 = arith.addf %56, %57 : vector<16x256xf32>
    %cst_29 = arith.constant 0.000000e+00 : f32
    %59 = vector.broadcast %cst_29 : f32 to vector<16x256xf32>
    %60 = arith.maximumf %58, %59 : vector<16x256xf32>
    %c17_i32_30 = arith.constant 17 : i32
    %61 = tpu.dynamic_rotate %60 by %c17_i32_30 dim 1 : vector<16x256xf32>, i32 -> vector<16x256xf32>
    %62 = vector.broadcast %0 : vector<1x256xf32> to vector<16x256xf32>
    %63 = arith.mulf %61, %62 : vector<16x256xf32>
    %64 = arith.truncf %63 : vector<16x256xf32> to vector<16x256xbf16>
    %c0_31 = arith.constant 0 : index
    %c0_32 = arith.constant 0 : index
    %65 = vector.load %arg7[%c0_31, %c0_32] : memref<144x256xbf16, #tpu.memory_space<vmem>>, vector<16x256xbf16>
    tpu.vector_store %arg7[%c0_31, %c0_32], %64 {strides = array<i32>} : memref<144x256xbf16, #tpu.memory_space<vmem>>, vector<16x256xbf16>,
    %c16_i32_33 = arith.constant 16 : i32
    %66 = tpu.dynamic_rotate %60 by %c16_i32_33 dim 1 : vector<16x256xf32>, i32 -> vector<16x256xf32>
    %67 = vector.broadcast %1 : vector<1x256xf32> to vector<16x256xf32>
    %68 = arith.mulf %66, %67 : vector<16x256xf32>
    %69 = arith.truncf %68 : vector<16x256xf32> to vector<16x256xbf16>
    %c16_34 = arith.constant 16 : index
    %c0_35 = arith.constant 0 : index
    %70 = vector.load %arg7[%c16_34, %c0_35] : memref<144x256xbf16, #tpu.memory_space<vmem>>, vector<16x256xbf16>
    tpu.vector_store %arg7[%c16_34, %c0_35], %69 {strides = array<i32>} : memref<144x256xbf16, #tpu.memory_space<vmem>>, vector<16x256xbf16>,
    %c15_i32_36 = arith.constant 15 : i32
    %71 = tpu.dynamic_rotate %60 by %c15_i32_36 dim 1 : vector<16x256xf32>, i32 -> vector<16x256xf32>
    %72 = vector.broadcast %2 : vector<1x256xf32> to vector<16x256xf32>
    %73 = arith.mulf %71, %72 : vector<16x256xf32>
    %74 = arith.truncf %73 : vector<16x256xf32> to vector<16x256xbf16>
    %c32_37 = arith.constant 32 : index
    %c0_38 = arith.constant 0 : index
    %75 = vector.load %arg7[%c32_37, %c0_38] : memref<144x256xbf16, #tpu.memory_space<vmem>>, vector<16x256xbf16>
    tpu.vector_store %arg7[%c32_37, %c0_38], %74 {strides = array<i32>} : memref<144x256xbf16, #tpu.memory_space<vmem>>, vector<16x256xbf16>,
    %c1_i32_39 = arith.constant 1 : i32
    %76 = tpu.dynamic_rotate %60 by %c1_i32_39 dim 1 : vector<16x256xf32>, i32 -> vector<16x256xf32>
    %77 = vector.broadcast %3 : vector<1x256xf32> to vector<16x256xf32>
    %78 = arith.mulf %76, %77 : vector<16x256xf32>
    %79 = arith.truncf %78 : vector<16x256xf32> to vector<16x256xbf16>
    %c48_40 = arith.constant 48 : index
    %c0_41 = arith.constant 0 : index
    %80 = vector.load %arg7[%c48_40, %c0_41] : memref<144x256xbf16, #tpu.memory_space<vmem>>, vector<16x256xbf16>
    tpu.vector_store %arg7[%c48_40, %c0_41], %79 {strides = array<i32>} : memref<144x256xbf16, #tpu.memory_space<vmem>>, vector<16x256xbf16>,
    %81 = arith.truncf %60 : vector<16x256xf32> to vector<16x256xbf16>
    %c64_42 = arith.constant 64 : index
    %c0_43 = arith.constant 0 : index
    %82 = vector.load %arg7[%c64_42, %c0_43] : memref<144x256xbf16, #tpu.memory_space<vmem>>, vector<16x256xbf16>
    tpu.vector_store %arg7[%c64_42, %c0_43], %81 {strides = array<i32>} : memref<144x256xbf16, #tpu.memory_space<vmem>>, vector<16x256xbf16>,
    %c255_i32_44 = arith.constant 255 : i32
    %83 = tpu.dynamic_rotate %60 by %c255_i32_44 dim 1 : vector<16x256xf32>, i32 -> vector<16x256xf32>
    %84 = vector.broadcast %4 : vector<1x256xf32> to vector<16x256xf32>
    %85 = arith.mulf %83, %84 : vector<16x256xf32>
    %86 = arith.truncf %85 : vector<16x256xf32> to vector<16x256xbf16>
    %c80_45 = arith.constant 80 : index
    %c0_46 = arith.constant 0 : index
    %87 = vector.load %arg7[%c80_45, %c0_46] : memref<144x256xbf16, #tpu.memory_space<vmem>>, vector<16x256xbf16>
    tpu.vector_store %arg7[%c80_45, %c0_46], %86 {strides = array<i32>} : memref<144x256xbf16, #tpu.memory_space<vmem>>, vector<16x256xbf16>,
    %c241_i32_47 = arith.constant 241 : i32
    %88 = tpu.dynamic_rotate %60 by %c241_i32_47 dim 1 : vector<16x256xf32>, i32 -> vector<16x256xf32>
    %89 = vector.broadcast %5 : vector<1x256xf32> to vector<16x256xf32>
    %90 = arith.mulf %88, %89 : vector<16x256xf32>
    %91 = arith.truncf %90 : vector<16x256xf32> to vector<16x256xbf16>
    %c96_48 = arith.constant 96 : index
    %c0_49 = arith.constant 0 : index
    %92 = vector.load %arg7[%c96_48, %c0_49] : memref<144x256xbf16, #tpu.memory_space<vmem>>, vector<16x256xbf16>
    tpu.vector_store %arg7[%c96_48, %c0_49], %91 {strides = array<i32>} : memref<144x256xbf16, #tpu.memory_space<vmem>>, vector<16x256xbf16>,
    %c240_i32_50 = arith.constant 240 : i32
    %93 = tpu.dynamic_rotate %60 by %c240_i32_50 dim 1 : vector<16x256xf32>, i32 -> vector<16x256xf32>
    %94 = vector.broadcast %6 : vector<1x256xf32> to vector<16x256xf32>
    %95 = arith.mulf %93, %94 : vector<16x256xf32>
    %96 = arith.truncf %95 : vector<16x256xf32> to vector<16x256xbf16>
    %c112_51 = arith.constant 112 : index
    %c0_52 = arith.constant 0 : index
    %97 = vector.load %arg7[%c112_51, %c0_52] : memref<144x256xbf16, #tpu.memory_space<vmem>>, vector<16x256xbf16>
    tpu.vector_store %arg7[%c112_51, %c0_52], %96 {strides = array<i32>} : memref<144x256xbf16, #tpu.memory_space<vmem>>, vector<16x256xbf16>,
    %c239_i32_53 = arith.constant 239 : i32
    %98 = tpu.dynamic_rotate %60 by %c239_i32_53 dim 1 : vector<16x256xf32>, i32 -> vector<16x256xf32>
    %99 = vector.broadcast %7 : vector<1x256xf32> to vector<16x256xf32>
    %100 = arith.mulf %98, %99 : vector<16x256xf32>
    %101 = arith.truncf %100 : vector<16x256xf32> to vector<16x256xbf16>
    %c128_54 = arith.constant 128 : index
    %c0_55 = arith.constant 0 : index
    %102 = vector.load %arg7[%c128_54, %c0_55] : memref<144x256xbf16, #tpu.memory_space<vmem>>, vector<16x256xbf16>
    tpu.vector_store %arg7[%c128_54, %c0_55], %101 {strides = array<i32>} : memref<144x256xbf16, #tpu.memory_space<vmem>>, vector<16x256xbf16>,
    %c0_56 = arith.constant 0 : index
    %c0_57 = arith.constant 0 : index
    %103 = vector.load %arg4[%c0_56, %c0_57] : memref<8x144xbf16, #tpu.memory_space<vmem>>, vector<8x144xbf16>
    %c0_58 = arith.constant 0 : index
    %c0_59 = arith.constant 0 : index
    %104 = vector.load %arg7[%c0_58, %c0_59] : memref<144x256xbf16, #tpu.memory_space<vmem>>, vector<144x256xbf16>
    %cst_60 = arith.constant dense<0.000000e+00> : vector<8x256xf32>
    %105 = tpu.matmul %103, %104, %cst_60 {dimension_numbers = #tpu.dot_dimension_numbers<[1], [0], [0], [1], [0, 0, 1, 1], [], []>} : vector<8x144xbf16>, vector<144x256xbf16>, vector<8x256xf32> -> vector<8x256xf32>
    %106 = vector.broadcast %9 : vector<8x1xf32> to vector<8x256xf32>
    %107 = arith.addf %105, %106 : vector<8x256xf32>
    %cst_61 = arith.constant 0.000000e+00 : f32
    %108 = vector.broadcast %cst_61 : f32 to vector<8x256xf32>
    %109 = arith.maximumf %107, %108 : vector<8x256xf32>
    %c0_62 = arith.constant 0 : index
    %c0_63 = arith.constant 0 : index
    %c0_64 = arith.constant 0 : index
    %110 = vector.load %arg6[%c0_62, %c0_63, %c0_64] : memref<1x8x256xf32, #tpu.memory_space<vmem>>, vector<1x8x256xf32>
    %111 = vector.shape_cast %110 : vector<1x8x256xf32> to vector<8x256xf32>
    %112 = vector.shape_cast %109 : vector<8x256xf32> to vector<1x8x256xf32>
    tpu.vector_store %arg6[%c0_62, %c0_63, %c0_64], %112 {strides = array<i32>} : memref<1x8x256xf32, #tpu.memory_space<vmem>>, vector<1x8x256xf32>,
    return
  }
  func.func @transform_0(%arg0: i32) -> (i32, i32) {
    %c0_i32 = arith.constant 0 : i32
    %c0_i32_0 = arith.constant 0 : i32
    %c0_i32_1 = arith.constant 0 : i32
    return %c0_i32, %c0_i32_0 : i32, i32
  }
  func.func @transform_1(%arg0: i32) -> (i32, i32, i32) {
    %c0_i32 = arith.constant 0 : i32
    %c0_i32_0 = arith.constant 0 : i32
    %c0_i32_1 = arith.constant 0 : i32
    return %arg0, %c0_i32, %c0_i32_0 : i32, i32, i32
  }
  func.func @transform_2(%arg0: i32) -> (i32, i32) {
    %c0_i32 = arith.constant 0 : i32
    %c0_i32_0 = arith.constant 0 : i32
    %c0_i32_1 = arith.constant 0 : i32
    return %c0_i32, %c0_i32_0 : i32, i32
  }
  func.func @transform_3(%arg0: i32) -> (i32, i32) {
    %c0_i32 = arith.constant 0 : i32
    %c0_i32_0 = arith.constant 0 : i32
    %c0_i32_1 = arith.constant 0 : i32
    return %c0_i32, %c0_i32_0 : i32, i32
  }
  func.func @transform_4(%arg0: i32) -> (i32, i32) {
    %c0_i32 = arith.constant 0 : i32
    %c0_i32_0 = arith.constant 0 : i32
    %c0_i32_1 = arith.constant 0 : i32
    return %c0_i32, %c0_i32_0 : i32, i32
  }
  func.func @transform_5(%arg0: i32) -> (i32, i32, i32) {
    %c0_i32 = arith.constant 0 : i32
    %c0_i32_0 = arith.constant 0 : i32
    %c0_i32_1 = arith.constant 0 : i32
    return %arg0, %c0_i32, %c0_i32_0 : i32, i32, i32
  }
}

</mosaic_0001>

<bundles_post_ra>
// kernel: tpu_custom_call.1
= control target key start
LH: loop header
LB: loop body
LE: loop exit
PB: predicated region body
PF: predicated region fallthrough
CT: control target
= control target key end

     0   :  { %10 = vsyncpa [#allocation4], 0  ;;  %s1940_s0 = inlined_call_operand.vmem [shape: f32[9,256], index: 0, kind: input, shape index: {}]   ;;  %s1941_s1 = inlined_call_operand.hbm [shape: f32[2,16,256], index: 1, kind: input, shape index: {}]   ;;  %s1942_s2 = inlined_call_operand.hbm [shape: bf16[16,144], index: 2, kind: input, shape index: {}]   ;;  %s1943_s3 = inlined_call_operand.vmem [shape: bf16[8,144], index: 3, kind: input, shape index: {}]   ;;  %s1944_s4 = inlined_call_operand.vmem [shape: f32[32,1], index: 4, kind: input, shape index: {}]   ;;  %s1945_s5 = inlined_call_operand.hbm [shape: f32[2,8,256], index: 5, kind: output, shape index: {}]  }
   0x1   :  { %12 = vsyncpa [#allocation4 + $0x1], 0 }
   0x2   :  { %13 = vsyncpa [#allocation7], 0 }
   0x3   :  { %14 = vsyncpa [#allocation5], 0 }
   0x4   :  { %16 = vsyncpa [#allocation5 + $0x1], 0  ;;  %s1254_s18 = smov 0   ;;  %s1256_s19 = smov 0  }
   0x5   :  { %s1258_s20 = smov 0   ;;  %s1260_s21 = smov 0  }
   0x6 LB: > { %s1275_s22 = sadd.s32 4294967295, %s1206_s21   ;;  %s970_s23 = sadd.s32 4294967294, %s1206_s21   ;;  %s1206_s21 = sphi %s1260_s21, %s1965_s21   ;;  %s1202_s20 = sphi %s1258_s20, %s1964_s20   ;;  %s1198_s19 = sphi %s1256_s19, %s1963_s19   ;;  %s1194_s18 = sphi %s1254_s18, %s1962_s18  }
   0x7   : > { %p63_p0 = scmp.ne.s32.totalorder %s1198_s19, %s1194_s18  ;;  %p1946_p1 = scmp.eq.s32.totalorder %s1275_s22, 0 }
   0x8   : > { %p156_p3 = scmp.eq.s32.totalorder %s970_s23, 1  ;;  %p971_p5 = scmp.ge.s32.totalorder %s1206_s21, 1 }
   0x9   : > { %p1284_p4 = por %p1946_p1, %p63_p0  ;;  %p163_p7 = scmp.lt.s32.totalorder %s1206_s21, 3 }
   0xa   : > { %p1289_p6 = por %p156_p3, %p63_p0  ;;  %s1208_s27 = smov [#allocation6]  }
   0xb   : > { %s1949_s24 = scalar_select %p1284_p4, 1, 0 }
   0xc   : > { %s1950_s25 = scalar_select %p1289_p6, 1, 0 }
   0xd   : > { %p1294_p8 = pnand %p971_p5, %p163_p7  ;;  %s178_s28 = sshll.u32 %s1208_s27, 4  ;;  %s1298_s28 = int_to_ptr.vmem [resolvable:$true] %s178_s28 }
   0xe   : > { %s1310_s30 = sadd.s32 1, %s1206_s21   ;;  %s50_s6 = sadd.s32 1, %s1202_s20 }
   0xf   : > { %s1951_s26 = scalar_select %p1294_p8, 1, 0 }
  0x10   : > { %p1009_p9 = pneg %p1294_p8  ;;  %s47_s7 = ssub.s32 %s1206_s21, %s1310_s30 }
  0x11   : > { %s1078_s10 = scalar_lea.hbm %s1942_s2, 256 }
  0x12   : > { %p1305_p11 = pnand %p1009_p9, %p1946_p1  ;;  %p1079_p12 = scmp.ne.s32.totalorder %s1942_s2, %s1078_s10 }
  0x13   : > { %p1085_p5 = scmp.lt.u32.totalorder %s1078_s10, %s1942_s2 }
  0x14   : > { %p1080_p13 = pneg %p1305_p11 }
  0x16   : > { %p1081_p0 = pnand %p1080_p13, %p1079_p12 }
  0x18   : > { %p1082_p3 = pneg %p1081_p0 }
  0x1a   : > { %p1087_p7 = pnand %p1085_p5, %p1082_p3 }
  0x1c   : > { %1090 = shalt.err (!%p1087_p7)
}
  0x1d   : > { %s1091_s15 = scalar_lea.vmem %s1298_s28, 256  ;;  %p1099_p2 = scmp.lt.s32.totalorder %s1298_s28, %s1298_s28 }
  0x1e   : > { %p1092_p9 = scmp.ne.s32.totalorder %s1298_s28, %s1091_s15  ;;  %p1100_p6 = scmp.lt.s32.totalorder %s1091_s15, %s1091_s15 }
  0x20   : > { %p1094_p10 = pnand %p1092_p9, %p1080_p13  ;;  %p1101_p4 = por %p1100_p6, %p1099_p2 }
  0x22   : > { %p1095_p1 = pneg %p1094_p10 }
  0x24   : > { %p1102_p8 = pnand %p1101_p4, %p1095_p1 }
  0x26   : > { %1105 = shalt.err (!%p1102_p8)
}
  0x27   : > { %s1209_s16 = smov 128   ;;  %s1210_s17 = smov 8  }
  0x28   : > { %1012 = dma.hbm_to_vmem [thread:$0]  (!%p1305_p11), %s1942_s2, 256, %s1298_s28, [#allocation7], %s1209_s16, %s1209_s16, %s1210_s17  }
  0x29   : > { %p48_p2 = scmp.eq.s32.totalorder %s47_s7, 0  ;;  %p57_p1 = scmp.ne.s32.totalorder %s1202_s20, %s1198_s19 }
  0x2a   : > { %p58_p4 = scmp.eq.s32.totalorder %s1206_s21, 0  ;;  %p1022_p6 = scmp.lt.s32.totalorder %s1206_s21, 2 }
  0x2b   : > { %s1341_s8 = scalar_select %p48_p2, %s1202_s20, %s50_s6  }
  0x2c   : > { %p59_p8 = por %p58_p4, %p57_p1  ;;  %p1953_p10 = scmp.eq.s32.totalorder %s1275_s22, 1 }
  0x2d   : > { %s198_s10 = sand.u32 1, %s1202_s20   ;;  %s999_s11 = sshll.u32 %s1206_s21, 9 }
  0x2e   : > { %p1345_p12 = por %p1953_p10, %p57_p1  ;;  %s974_s12 = sshll.u32 %s198_s10, 5 }
  0x2f   : > { %s1354_s14 = scalar_lea.hbm %s1941_s1, %s999_s11  ;;  %s202_s28 = scalar_lea.vmem [#allocation3], %s974_s12 }
  0x30   : > { %s209_s6 = sshll.u32 %s202_s28, 4  ;;  %p1356_p11 = pnand %p1022_p6, %p59_p8  ;;  %s1360_s6 = int_to_ptr.vmem [resolvable:$true] %s209_s6 }
  0x31   : > { %s1362_s15 = scalar_lea.sflag [#allocation4], %s198_s10  ;;  %s1106_s16 = scalar_lea.hbm %s1354_s14, 512 }
  0x32   : > { %p1107_p13 = scmp.ne.s32.totalorder %s1354_s14, %s1106_s16  ;;  %p1108_p0 = pneg %p1356_p11 }
  0x33   : > { %s1111_s27 = scalar_lea.hbm %s1941_s1, 1024  ;;  %p1112_p7 = scmp.lt.u32.totalorder %s1354_s14, %s1941_s1 }
  0x34   : > { %p1109_p3 = pnand %p1108_p0, %p1107_p13  ;;  %p1113_p9 = scmp.lt.u32.totalorder %s1111_s27, %s1106_s16 }
  0x35   : > { %p1115_p1 = scmp.lt.u32.totalorder %s1106_s16, %s1354_s14 }
  0x36   : > { %p1110_p5 = pneg %p1109_p3  ;;  %p1114_p2 = por %p1113_p9, %p1112_p7 }
  0x38   : > { %p1116_p4 = por %p1115_p1, %p1114_p2 }
  0x3a   : > { %p1117_p6 = pnand %p1116_p4, %p1110_p5 }
  0x3c   : > { %1120 = shalt.err (!%p1117_p6)
}
  0x3d   : > { %s1121_s10 = scalar_lea.vmem %s1360_s6, 512  ;;  %s1211_s29 = smov [#allocation3]  }
  0x3e   : > { %p1122_p8 = scmp.ne.s32.totalorder %s1360_s6, %s1121_s10  ;;  %s1126_s13 = sshll.u32 %s1211_s29, 4  ;;  %s1127_s13 = int_to_ptr.vmem [resolvable:$false] %s1126_s13 }
  0x3f   : > { %s1128_s28 = scalar_lea.vmem %s1127_s13, 1024  ;;  %p1129_p3 = scmp.lt.s32.totalorder %s1360_s6, %s1127_s13 }
  0x40   : > { %p1124_p10 = pnand %p1122_p8, %p1108_p0  ;;  %p1130_p7 = scmp.lt.s32.totalorder %s1128_s28, %s1121_s10 }
  0x42   : > { %p1125_p13 = pneg %p1124_p10  ;;  %p1131_p9 = por %p1130_p7, %p1129_p3 }
  0x44   : > { %p1132_p2 = pnand %p1131_p9, %p1125_p13 }
  0x46   : > { %1135 = shalt.err (!%p1132_p2)
}
  0x47   : > { %s1212_s16 = smov 256   ;;  %s1213_s17 = smov 16  }
  0x48   : > { %1016 = dma.hbm_to_vmem [thread:$0]  (!%p1356_p11), %s1354_s14, 512, %s1360_s6, %s1362_s15, %s1212_s16, %s1212_s16, %s1213_s17  }
  0x49   : > { %p1956_p0 = scmp.ne.s32.totalorder %s1951_s26, 0 }
  0x4a   : > { %s1393_s23 = sand.u32 (!%p1956_p0), 1, %s1198_s19   ;;  %p1957_p5 = scmp.ne.s32.totalorder (!%p1956_p0), %s1949_s24, 0 }
  0x4b   : > { %221 = sbr.rel (%p1956_p0) target bundleno = 904 (0x388), region = 40  ;;  %s978_s27 = sshll.u32 (!%p1956_p0), %s1393_s23, 5 }
  0x4c   : > { %s224_s11 = scalar_lea.sflag (!%p1956_p0), [#allocation4], %s1393_s23  ;;  %s227_s12 = scalar_lea.vmem (!%p1956_p0), [#allocation3], %s978_s27 }
  0x52   : > { %1181 = dma.done.wait (%p1957_p5), %s224_s11, 512  }
  0x53   : > { %1183 = vsyncadd (%p1957_p5), %s224_s11, 4294966784  ;;  %p1958_p1 = scmp.eq.s32.totalorder %s1275_s22, 0 }
  0x55   : > { %1185 = dma.done.wait (%p1958_p1), [#allocation7], 256   ;;  %p1959_p11 = pmov %p1958_p1 }
  0x56   : > { %v1405_v0 = vld [vmem:[%s227_s12 + $0x8] sm:$0xff]  ;;  %v1407_v1 = vld [vmem:[%s227_s12] sm:$0xff]  ;;  %s1214_s26 = smov 17   ;;  %v1413_v2 = vld [vmem:[%s227_s12 + $0x18] sm:$0xff]  ;;  %s1215_s24 = smov 16   ;;  %vm582_vm0 = vcmask 130048   ;;  %v289_v10 = vlaneseq }
  0x57   : > { %1187 = vsyncadd (%p1959_p11), [#allocation7], 4294967040  ;;  %285 = vrot.lane.b32.xlu1 %v1405_v0, %s1214_s26  ;;  %281 = vrot.lane.b32.xlu0 %v1407_v1, %s1214_s26  ;;  %v1415_v3 = vld [vmem:[%s227_s12 + $0x10] sm:$0xff]  ;;  %s1216_s14 = smov 15   ;;  %v412_v4 = vpack.c.bf16 %v1413_v2, %v1405_v0  ;;  %s1217_s6 = smov 1   ;;  %v1222_v7 = vmov 0  }
  0x58   : > { %v411_v5 = vpack.c.bf16 %v1415_v3, %v1407_v1  ;;  %s1218_s7 = smov 127   ;;  %s1219_s15 = smov 113   ;;  %v1075_v6 = vld [vmem:[#allocation6 + $0x4] ss:$8 sps:$4 sm:$0xff]   ;;  %1071 = vset.pattern.permute.xlu0 %v1222_v7  ;;  %1072 = vset.pattern.permute.xlu1 %v1222_v7  ;;  %v298_v11 = vshrl.u32 %v289_v10, 7  ;;  %v1488_v12 = vand.u32 127, %v289_v10 }
  0x59   : > { %s1220_s10 = smov 112   ;;  %990 = vmatprep.mubr.msk.bf16.mxu0 %vm582_vm0, %v1075_v6  ;;  %s1221_s29 = smov 111   ;;  %v274_v8 = vld [vmem:[%s1944_s4] sm:$0xff]  ;;  %v275_v9 = vld [vmem:[%s1944_s4 + $0x8] sm:$0xff] }
  0x5a   : > { %v1490_v13 = vsub.s32 0, %v298_v11  ;;  %v1492_v14 = vsub.s32 1, %v298_v11  ;;  %v259_v15 = vld [vmem:[%s1940_s0] ss:$8 sm:$0x3]  ;;  %vm291_vm1 = vcmp.lt.s32.totalorder %v1488_v12, 17 }
  0x5b   : > { %287 = vrot.lane.b32.xlu1 %v1413_v2, %s1214_s26  ;;  %283 = vrot.lane.b32.xlu0 %v1415_v3, %s1214_s26  ;;  %v981_v30 = vld [vmem:[%s1940_s0 + $0x1] ss:$8 sm:$0x3]  ;;  %vm323_vm2 = vcmp.lt.s32.totalorder %v1488_v12, 16  ;;  %vm355_vm3 = vcmp.lt.s32.totalorder %v1488_v12, 15  ;;  %vm387_vm4 = vcmp.lt.s32.totalorder %v1488_v12, 1 }
  0x5c   : > { %v1499_v18 = vrot.slane %v259_v15, %v1490_v13  ;;  %v1502_v19 = vrot.slane %v259_v15, %v1492_v14  ;;  %v1521_v35 = vrot.slane %v981_v30, %v1490_v13  ;;  %v1524_v36 = vrot.slane %v981_v30, %v1492_v14  ;;  %v982_v47 = vld [vmem:[%s1940_s0 + $0x2] ss:$8 sm:$0x3]  ;;  %v983_v6 = vld [vmem:[%s1940_s0 + $0x3] ss:$8 sm:$0x3] }
  0x5d   : > { %v1543_v52 = vrot.slane %v982_v47, %v1490_v13  ;;  %v1546_v53 = vrot.slane %v982_v47, %v1492_v14  ;;  %v1565_v11 = vrot.slane %v983_v6, %v1490_v13  ;;  %v1568_v15 = vrot.slane %v983_v6, %v1492_v14  ;;  %s1223_s17 = smov [#allocation8]  }
  0x5e   : > { %vm423_vm5 = vcmp.lt.s32.totalorder %v1488_v12, 127  ;;  %vm455_vm6 = vcmp.lt.s32.totalorder %v1488_v12, 113  ;;  %vm487_vm7 = vcmp.lt.s32.totalorder %v1488_v12, 112  ;;  %vm519_vm8 = vcmp.lt.s32.totalorder %v1488_v12, 111  ;;  %s1140_s27 = sshll.u32 %s1223_s17, 4  ;;  %s1141_s27 = int_to_ptr.vmem [resolvable:$false] %s1140_s27 }
  0x5f   : > { %317 = vrot.lane.b32.xlu1 %v1415_v3, %s1215_s24  ;;  %315 = vrot.lane.b32.xlu0 %v1407_v1, %s1215_s24  ;;  %s1142_s11 = scalar_lea.vmem %s1141_s27, 512 }
  0x63   : > { %321 = vrot.lane.b32.xlu1 %v1413_v2, %s1215_s24  ;;  %319 = vrot.lane.b32.xlu0 %v1405_v0, %s1215_s24 }
  0x67   : > { %349 = vrot.lane.b32.xlu1 %v1415_v3, %s1216_s14  ;;  %347 = vrot.lane.b32.xlu0 %v1407_v1, %s1216_s14 }
  0x6b   : > { %353 = vrot.lane.b32.xlu1 %v1413_v2, %s1216_s14  ;;  %351 = vrot.lane.b32.xlu0 %v1405_v0, %s1216_s14 }
  0x6f   : > { %381 = vrot.lane.b32.xlu1 %v1415_v3, %s1217_s6  ;;  %379 = vrot.lane.b32.xlu0 %v1407_v1, %s1217_s6 }
  0x73   : > { %385 = vrot.lane.b32.xlu1 %v1413_v2, %s1217_s6  ;;  %383 = vrot.lane.b32.xlu0 %v1405_v0, %s1217_s6 }
  0x77   : > { %417 = vrot.lane.b32.xlu1 %v1415_v3, %s1218_s7  ;;  %415 = vrot.lane.b32.xlu0 %v1407_v1, %s1218_s7 }
  0x7b   : > { %421 = vrot.lane.b32.xlu1 %v1413_v2, %s1218_s7  ;;  %419 = vrot.lane.b32.xlu0 %v1405_v0, %s1218_s7 }
  0x7f   : > { %449 = vrot.lane.b32.xlu1 %v1415_v3, %s1219_s15  ;;  %447 = vrot.lane.b32.xlu0 %v1407_v1, %s1219_s15 }
  0x83   : > { %453 = vrot.lane.b32.xlu1 %v1413_v2, %s1219_s15  ;;  %451 = vrot.lane.b32.xlu0 %v1405_v0, %s1219_s15 }
  0x87   : > { %481 = vrot.lane.b32.xlu1 %v1415_v3, %s1220_s10  ;;  %479 = vrot.lane.b32.xlu0 %v1407_v1, %s1220_s10 }
  0x8b   : > { %485 = vrot.lane.b32.xlu1 %v1413_v2, %s1220_s10  ;;  %483 = vrot.lane.b32.xlu0 %v1405_v0, %s1220_s10 }
  0x8f   : > { %513 = vrot.lane.b32.xlu1 %v1415_v3, %s1221_s29  ;;  %511 = vrot.lane.b32.xlu0 %v1407_v1, %s1221_s29 }
  0x93   : > { %517 = vrot.lane.b32.xlu1 %v1413_v2, %s1221_s29  ;;  %515 = vrot.lane.b32.xlu0 %v1405_v0, %s1221_s29  ;;  %v985_v2 = vld [vmem:[%s1940_s0 + $0x6] ss:$8 sm:$0x3] }
  0x97   : > { %565 = vperm.xlu0 %1071, %v274_v8   ;;  %570 = vperm.xlu1 %1072, %v275_v9  }
  0xc9   : > { %v286_v16 = vpop.permute.xlu1 %285  ;;  %v282_v17 = vpop.permute.xlu0 %281 }
  0xca   : > { %v292_v20 = vsel %vm291_vm1, %v282_v17, %v286_v16  ;;  %v294_v21 = vsel %vm291_vm1, %v286_v16, %v282_v17 }
  0xcb   : > { %v307_v26 = vmul.f32 %v1499_v18, %v294_v21  ;;  %v308_v28 = vmul.f32 %v1502_v19, %v292_v20 }
  0xcd   : > { %v288_v22 = vpop.permute.xlu1 %287  ;;  %v284_v23 = vpop.permute.xlu0 %283 }
  0xce   : > { %v293_v24 = vsel %vm291_vm1, %v284_v23, %v288_v22  ;;  %v295_v25 = vsel %vm291_vm1, %v288_v22, %v284_v23 }
  0xcf   : > { %v309_v27 = vmul.f32 %v1499_v18, %v295_v25  ;;  %v310_v29 = vmul.f32 %v1502_v19, %v293_v24 }
  0xd1   : > { %v318_v31 = vpop.permute.xlu1 %317  ;;  %v316_v32 = vpop.permute.xlu0 %315  ;;  %v312_v33 = vpack.c.bf16 %v310_v29, %v308_v28  ;;  %v311_v34 = vpack.c.bf16 %v309_v27, %v307_v26  ;;  %v984_v28 = vld [vmem:[%s1940_s0 + $0x5] ss:$8 sm:$0x3] }
  0xd3   : > { %586 = vmatprep.subr.bf16.mxu0 %v312_v33  ;;  %v1587_v33 = vrot.slane %v984_v28, %v1490_v13 }
  0xd4   : > { %587 = vmatpush1.bf16.msra.mxu0 %v311_v34  ;;  %v1590_v34 = vrot.slane %v984_v28, %v1492_v14 }
  0xd5   : > { %v322_v37 = vpop.permute.xlu1 %321  ;;  %v320_v38 = vpop.permute.xlu0 %319 }
  0xd6   : > { %v325_v39 = vsel %vm323_vm2, %v318_v31, %v322_v37  ;;  %v327_v40 = vsel %vm323_vm2, %v322_v37, %v318_v31  ;;  %v324_v41 = vsel %vm323_vm2, %v316_v32, %v320_v38  ;;  %v326_v42 = vsel %vm323_vm2, %v320_v38, %v316_v32 }
  0xd7   : > { %v341_v43 = vmul.f32 %v1521_v35, %v327_v40  ;;  %v342_v44 = vmul.f32 %v1524_v36, %v325_v39  ;;  %v339_v45 = vmul.f32 %v1521_v35, %v326_v42  ;;  %v340_v46 = vmul.f32 %v1524_v36, %v324_v41 }
  0xd9   : > { %v350_v48 = vpop.permute.xlu1 %349  ;;  %v348_v49 = vpop.permute.xlu0 %347  ;;  %v344_v50 = vpack.c.bf16 %v342_v44, %v340_v46  ;;  %v343_v51 = vpack.c.bf16 %v341_v43, %v339_v45 }
  0xdb   : > { %588 = vmatprep.subr.bf16.mxu0 %v344_v50  ;;  %v1618_v50 = vrot.slane %v985_v2, %v1492_v14 }
  0xdc   : > { %589 = vmatpush1.bf16.msra.mxu0 %v343_v51 }
  0xdd   : > { %v354_v54 = vpop.permute.xlu1 %353  ;;  %v352_v55 = vpop.permute.xlu0 %351 }
  0xde   : > { %v357_v56 = vsel %vm355_vm3, %v350_v48, %v354_v54  ;;  %v359_v57 = vsel %vm355_vm3, %v354_v54, %v350_v48  ;;  %v356_v58 = vsel %vm355_vm3, %v348_v49, %v352_v55  ;;  %v358_v59 = vsel %vm355_vm3, %v352_v55, %v348_v49 }
  0xdf   : > { %v373_v60 = vmul.f32 %v1543_v52, %v359_v57  ;;  %v374_v61 = vmul.f32 %v1546_v53, %v357_v56  ;;  %v371_v62 = vmul.f32 %v1543_v52, %v358_v59  ;;  %v372_v63 = vmul.f32 %v1546_v53, %v356_v58 }
  0xe0   : > { %v1615_v49 = vrot.slane %v985_v2, %v1490_v13  ;;  %v1073_v2 = vld [vmem:[#allocation6] ss:$8 sps:$4 sm:$0xff]  }
  0xe1   : > { %v382_v7 = vpop.permute.xlu1 %381  ;;  %v380_v8 = vpop.permute.xlu0 %379  ;;  %v376_v9 = vpack.c.bf16 %v374_v61, %v372_v63  ;;  %v375_v10 = vpack.c.bf16 %v373_v60, %v371_v62  ;;  %v986_v60 = vld [vmem:[%s1940_s0 + $0x7] ss:$8 sm:$0x3] }
  0xe3   : > { %590 = vmatprep.subr.bf16.mxu0 %v376_v9 }
  0xe4   : > { %591 = vmatpush1.bf16.msra.mxu0 %v375_v10 }
  0xe5   : > { %v386_v16 = vpop.permute.xlu1 %385  ;;  %v384_v17 = vpop.permute.xlu0 %383 }
  0xe6   : > { %v389_v20 = vsel %vm387_vm4, %v382_v7, %v386_v16  ;;  %v391_v21 = vsel %vm387_vm4, %v386_v16, %v382_v7  ;;  %v388_v22 = vsel %vm387_vm4, %v380_v8, %v384_v17  ;;  %v390_v23 = vsel %vm387_vm4, %v384_v17, %v380_v8 }
  0xe7   : > { %v405_v24 = vmul.f32 %v1565_v11, %v391_v21  ;;  %v406_v25 = vmul.f32 %v1568_v15, %v389_v20  ;;  %v403_v26 = vmul.f32 %v1565_v11, %v390_v23  ;;  %v404_v27 = vmul.f32 %v1568_v15, %v388_v22 }
  0xe8   : > { %v1637_v7 = vrot.slane %v986_v60, %v1490_v13  ;;  %v1640_v8 = vrot.slane %v986_v60, %v1492_v14 }
  0xe9   : > { %v418_v29 = vpop.permute.xlu1 %417  ;;  %v416_v30 = vpop.permute.xlu0 %415  ;;  %v408_v31 = vpack.c.bf16 %v406_v25, %v404_v27  ;;  %v407_v32 = vpack.c.bf16 %v405_v24, %v403_v26  ;;  %v987_v26 = vld [vmem:[%s1940_s0 + $0x10] ss:$8 sm:$0x3] }
  0xeb   : > { %592 = vmatprep.subr.bf16.mxu0 %v408_v31  ;;  %v1659_v31 = vrot.slane %v987_v26, %v1490_v13 }
  0xec   : > { %593 = vmatpush1.bf16.msra.mxu0 %v407_v32  ;;  %v1662_v32 = vrot.slane %v987_v26, %v1492_v14 }
  0xed   : > { %v422_v37 = vpop.permute.xlu1 %421  ;;  %v420_v38 = vpop.permute.xlu0 %419  ;;  %594 = vmatprep.subr.bf16.mxu0 %v412_v4 }
  0xee   : > { %v425_v39 = vsel %vm423_vm5, %v418_v29, %v422_v37  ;;  %v427_v40 = vsel %vm423_vm5, %v422_v37, %v418_v29  ;;  %v424_v41 = vsel %vm423_vm5, %v416_v30, %v420_v38  ;;  %v426_v42 = vsel %vm423_vm5, %v420_v38, %v416_v30 }
  0xef   : > { %v441_v43 = vmul.f32 %v1587_v33, %v425_v39  ;;  %v442_v44 = vmul.f32 %v1590_v34, %v427_v40  ;;  %v439_v45 = vmul.f32 %v1587_v33, %v424_v41  ;;  %v440_v0 = vmul.f32 %v1590_v34, %v426_v42 }
  0xf0   : > { %595 = vmatpush1.bf16.msra.mxu0 %v411_v5 }
  0xf1   : > { %v450_v4 = vpop.permute.xlu1 %449  ;;  %v448_v46 = vpop.permute.xlu0 %447  ;;  %v444_v47 = vpack.c.bf16 %v442_v44, %v440_v0  ;;  %v443_v48 = vpack.c.bf16 %v441_v43, %v439_v45 }
  0xf3   : > { %596 = vmatprep.subr.bf16.mxu0 %v444_v47 }
  0xf4   : > { %597 = vmatpush1.bf16.msra.mxu0 %v443_v48 }
  0xf5   : > { %v454_v1 = vpop.permute.xlu1 %453  ;;  %v452_v3 = vpop.permute.xlu0 %451 }
  0xf6   : > { %v457_v5 = vsel %vm455_vm6, %v450_v4, %v454_v1  ;;  %v459_v51 = vsel %vm455_vm6, %v454_v1, %v450_v4  ;;  %v456_v54 = vsel %vm455_vm6, %v448_v46, %v452_v3  ;;  %v458_v55 = vsel %vm455_vm6, %v452_v3, %v448_v46 }
  0xf7   : > { %v473_v56 = vmul.f32 %v1615_v49, %v457_v5  ;;  %v474_v57 = vmul.f32 %v1618_v50, %v459_v51  ;;  %v471_v58 = vmul.f32 %v1615_v49, %v456_v54  ;;  %v472_v59 = vmul.f32 %v1618_v50, %v458_v55 }
  0xf9   : > { %v482_v61 = vpop.permute.xlu1 %481  ;;  %v480_v62 = vpop.permute.xlu0 %479  ;;  %v476_v63 = vpack.c.bf16 %v474_v57, %v472_v59  ;;  %v475_v6 = vpack.c.bf16 %v473_v56, %v471_v58 }
  0xfb   : > { %598 = vmatprep.subr.bf16.mxu0 %v476_v63 }
  0xfc   : > { %599 = vmatpush1.bf16.msra.mxu0 %v475_v6  ;;  %v276_v6 = vld [vmem:[%s1944_s4 + $0x10] sm:$0xff] }
  0xfd   : > { %v486_v9 = vpop.permute.xlu1 %485  ;;  %v484_v10 = vpop.permute.xlu0 %483 }
  0xfe   : > { %v489_v16 = vsel %vm487_vm7, %v482_v61, %v486_v9  ;;  %v491_v17 = vsel %vm487_vm7, %v486_v9, %v482_v61  ;;  %v488_v20 = vsel %vm487_vm7, %v480_v62, %v484_v10  ;;  %v490_v21 = vsel %vm487_vm7, %v484_v10, %v480_v62  ;;  %v1747_v62 = vld [vmem:[%s1943_s3] sm:$0xff] }
  0xff   : > { %v505_v22 = vmul.f32 %v1637_v7, %v489_v16  ;;  %v506_v23 = vmul.f32 %v1640_v8, %v491_v17  ;;  %v503_v24 = vmul.f32 %v1637_v7, %v488_v20  ;;  %v504_v25 = vmul.f32 %v1640_v8, %v490_v21 }
 0x100   : > { %v992_v63 = vcombine.high %v1747_v62, %v1747_v62 }
 0x101   : > { %v514_v27 = vpop.permute.xlu1 %513  ;;  %v512_v28 = vpop.permute.xlu0 %511  ;;  %v508_v29 = vpack.c.bf16 %v506_v23, %v504_v25  ;;  %v507_v30 = vpack.c.bf16 %v505_v22, %v503_v24 }
 0x102   : > { %993 = vmatprep.mubr.msk.bf16.mxu1 %vm582_vm0, %v992_v63 }
 0x103   : > { %600 = vmatprep.subr.bf16.mxu0 %v508_v29 }
 0x104   : > { %601 = vmatpush1.bf16.msra.mxu0 %v507_v30 }
 0x105   : > { %v518_v37 = vpop.permute.xlu1 %517  ;;  %v516_v38 = vpop.permute.xlu0 %515 }
 0x106   : > { %v521_v39 = vsel %vm519_vm8, %v514_v27, %v518_v37  ;;  %v523_v40 = vsel %vm519_vm8, %v518_v37, %v514_v27  ;;  %v520_v41 = vsel %vm519_vm8, %v512_v28, %v516_v38  ;;  %v522_v42 = vsel %vm519_vm8, %v516_v38, %v512_v28 }
 0x107   : > { %v537_v13 = vmul.f32 %v1659_v31, %v521_v39  ;;  %v538_v14 = vmul.f32 %v1662_v32, %v523_v40  ;;  %v535_v43 = vmul.f32 %v1659_v31, %v520_v41  ;;  %v536_v44 = vmul.f32 %v1662_v32, %v522_v42 }
 0x109   : > { %v540_v45 = vpack.c.bf16 %v538_v14, %v536_v44  ;;  %v539_v0 = vpack.c.bf16 %v537_v13, %v535_v43 }
 0x10b   : > { %602 = vmatprep.subr.bf16.mxu0 %v540_v45 }
 0x10c   : > { %603 = vmatpush1.bf16.msra.mxu0 %v539_v0 }
 0x10f   : > { %619 = vmatmul.mubr.bf16.vlgmr.msra.gmra.mrb[0].mxu0 %v1073_v2 }
 0x116   : > { %v566_v4 = vpop.permute.xlu0 %565  ;;  %v571_v47 = vpop.permute.xlu1 %570 }
 0x1e2   : > { %v620_v46 = vpop.f32.mrb[0].mxu0 }
 0x1e3   : > { %v621_v48 = vadd.f32 %v620_v46, %v566_v4  ;;  %v622_v1 = vpop.f32.mrb[1].mxu0 }
 0x1e4   : > { %v623_v3 = vadd.f32 %v622_v1, %v566_v4  ;;  %v624_v5 = vpop.f32.mrb[2].mxu0 }
 0x1e5   : > { %v1676_v51 = vmax.f32 %v621_v48, 0.0  ;;  %v625_v54 = vadd.f32 %v624_v5, %v571_v47  ;;  %v626_v55 = vpop.f32.mrb[3].mxu0 }
 0x1e6   : > { %v627_v56 = vadd.f32 %v626_v55, %v571_v47  ;;  %v1682_v58 = vmax.f32 %v623_v3, 0.0 }
 0x1e7   : > { %v1678_v57 = vmax.f32 %v625_v54, 0.0  ;;  %633 = vrot.lane.b32.xlu1 %v1676_v51, %s1214_s26 }
 0x1e8   : > { %v1684_v59 = vmax.f32 %v627_v56, 0.0 }
 0x1e9   : > { %635 = vrot.lane.b32.xlu0 %v1678_v57, %s1214_s26  ;;  %v713_v60 = vpack.c.bf16 %v1678_v57, %v1676_v51 }
 0x1ea   : > { %v714_v61 = vpack.c.bf16 %v1684_v59, %v1682_v58 }
 0x1eb   : > { %653 = vrot.lane.b32.xlu1 %v1676_v51, %s1215_s24 }
 0x1ed   : > { %655 = vrot.lane.b32.xlu0 %v1678_v57, %s1215_s24 }
 0x1ef   : > { %673 = vrot.lane.b32.xlu1 %v1676_v51, %s1216_s14 }
 0x1f1   : > { %675 = vrot.lane.b32.xlu0 %v1678_v57, %s1216_s14 }
 0x1f3   : > { %693 = vrot.lane.b32.xlu1 %v1676_v51, %s1217_s6 }
 0x1f5   : > { %695 = vrot.lane.b32.xlu0 %v1678_v57, %s1217_s6 }
 0x1f7   : > { %717 = vrot.lane.b32.xlu1 %v1676_v51, %s1218_s7 }
 0x1f9   : > { %719 = vrot.lane.b32.xlu0 %v1678_v57, %s1218_s7 }
 0x1fb   : > { %737 = vrot.lane.b32.xlu1 %v1676_v51, %s1219_s15 }
 0x1fd   : > { %739 = vrot.lane.b32.xlu0 %v1678_v57, %s1219_s15 }
 0x1ff   : > { %757 = vrot.lane.b32.xlu1 %v1676_v51, %s1220_s10 }
 0x201   : > { %759 = vrot.lane.b32.xlu0 %v1678_v57, %s1220_s10 }
 0x203   : > { %637 = vrot.lane.b32.xlu1 %v1682_v58, %s1214_s26 }
 0x205   : > { %639 = vrot.lane.b32.xlu0 %v1684_v59, %s1214_s26 }
 0x207   : > { %657 = vrot.lane.b32.xlu1 %v1682_v58, %s1215_s24 }
 0x209   : > { %659 = vrot.lane.b32.xlu0 %v1684_v59, %s1215_s24 }
 0x20b   : > { %677 = vrot.lane.b32.xlu1 %v1682_v58, %s1216_s14 }
 0x20d   : > { %679 = vrot.lane.b32.xlu0 %v1684_v59, %s1216_s14 }
 0x20f   : > { %697 = vrot.lane.b32.xlu1 %v1682_v58, %s1217_s6 }
 0x211   : > { %699 = vrot.lane.b32.xlu0 %v1684_v59, %s1217_s6 }
 0x213   : > { %777 = vrot.lane.b32.xlu1 %v1676_v51, %s1221_s29 }
 0x215   : > { %779 = vrot.lane.b32.xlu0 %v1678_v57, %s1221_s29 }
 0x217   : > { %721 = vrot.lane.b32.xlu1 %v1682_v58, %s1218_s7 }
 0x219   : > { %723 = vrot.lane.b32.xlu0 %v1684_v59, %s1218_s7  ;;  %s980_s7 = sshll.u32 %s1393_s23, 4 }
 0x21b   : > { %741 = vrot.lane.b32.xlu1 %v1682_v58, %s1219_s15 }
 0x21d   : > { %743 = vrot.lane.b32.xlu0 %v1684_v59, %s1219_s15  ;;  %s1000_s15 = sshll.u32 %s1275_s22, 8  ;;  %s876_s22 = scalar_lea.sflag [#allocation5], %s1393_s23 }
 0x21e   : > { %s1896_s28 = scalar_lea.hbm %s1945_s5, %s1000_s15 }
 0x21f   : > { %761 = vrot.lane.b32.xlu1 %v1682_v58, %s1220_s10 }
 0x221   : > { %763 = vrot.lane.b32.xlu0 %v1684_v59, %s1220_s10  ;;  %s257_s10 = scalar_lea.vmem [#allocation8], %s980_s7 }
 0x223   : > { %781 = vrot.lane.b32.xlu1 %v1682_v58, %s1221_s29 }
 0x225   : > { %783 = vrot.lane.b32.xlu0 %v1684_v59, %s1221_s29  ;;  %s890_s29 = sshll.u32 %s257_s10, 4  ;;  %s1898_s29 = int_to_ptr.vmem [resolvable:$true] %s890_s29 }
 0x226   : > { %s1136_s16 = scalar_lea.vmem %s1898_s29, 256  ;;  %p1143_p10 = scmp.lt.s32.totalorder %s1898_s29, %s1141_s27 }
 0x227   : > { %818 = vperm.xlu1 %1072, %v276_v6   ;;  %p1137_p4 = scmp.ne.s32.totalorder %s1898_s29, %s1136_s16  ;;  %p1144_p13 = scmp.lt.s32.totalorder %s1142_s11, %s1136_s16 }
 0x229   : > { %p1138_p6 = pnand %p1137_p4, %p1345_p12  ;;  %p1145_p3 = por %p1144_p13, %p1143_p10 }
 0x22b   : > { %p1139_p8 = pneg %p1138_p6 }
 0x22d   : > { %p1146_p7 = pnand %p1145_p3, %p1139_p8 }
 0x259   : > { %v634_v9 = vpop.permute.xlu1 %633 }
 0x25b   : > { %v636_v10 = vpop.permute.xlu0 %635 }
 0x25d   : > { %v654_v16 = vpop.permute.xlu1 %653 }
 0x25f   : > { %v656_v17 = vpop.permute.xlu0 %655 }
 0x261   : > { %v674_v20 = vpop.permute.xlu1 %673 }
 0x263   : > { %v676_v21 = vpop.permute.xlu0 %675 }
 0x265   : > { %v694_v22 = vpop.permute.xlu1 %693 }
 0x267   : > { %v696_v23 = vpop.permute.xlu0 %695 }
 0x269   : > { %v1763_v24 = vpop.permute.xlu1 %717 }
 0x26b   : > { %v1765_v25 = vpop.permute.xlu0 %719 }
 0x26d   : > { %v1767_v26 = vpop.permute.xlu1 %737 }
 0x26f   : > { %v1769_v27 = vpop.permute.xlu0 %739 }
 0x271   : > { %v1771_v28 = vpop.permute.xlu1 %757 }
 0x273   : > { %v1773_v29 = vpop.permute.xlu0 %759 }
 0x275   : > { %v638_v30 = vpop.permute.xlu1 %637 }
 0x276   : > { %v641_v37 = vsel %vm291_vm1, %v634_v9, %v638_v30  ;;  %v643_v38 = vsel %vm291_vm1, %v638_v30, %v634_v9 }
 0x277   : > { %v640_v39 = vpop.permute.xlu0 %639  ;;  %v645_v42 = vmul.f32 %v643_v38, %v1499_v18  ;;  %v646_v43 = vmul.f32 %v641_v37, %v1502_v19 }
 0x278   : > { %v642_v40 = vsel %vm291_vm1, %v636_v10, %v640_v39  ;;  %v644_v41 = vsel %vm291_vm1, %v640_v39, %v636_v10 }
 0x279   : > { %v647_v13 = vmul.f32 %v644_v41, %v1499_v18  ;;  %v658_v14 = vpop.permute.xlu1 %657  ;;  %v648_v44 = vmul.f32 %v642_v40, %v1502_v19 }
 0x27a   : > { %v661_v45 = vsel %vm323_vm2, %v654_v16, %v658_v14  ;;  %v663_v0 = vsel %vm323_vm2, %v658_v14, %v654_v16 }
 0x27b   : > { %v660_v2 = vpop.permute.xlu0 %659  ;;  %v650_v4 = vpack.c.bf16 %v648_v44, %v646_v43  ;;  %v649_v46 = vpack.c.bf16 %v647_v13, %v645_v42  ;;  %v665_v48 = vmul.f32 %v663_v0, %v1521_v35  ;;  %v666_v1 = vmul.f32 %v661_v45, %v1524_v36 }
 0x27c   : > { %v662_v47 = vsel %vm323_vm2, %v656_v17, %v660_v2  ;;  %v664_v18 = vsel %vm323_vm2, %v660_v2, %v656_v17 }
 0x27d   : > { %v667_v19 = vmul.f32 %v664_v18, %v1521_v35  ;;  %v668_v3 = vmul.f32 %v662_v47, %v1524_v36  ;;  %830 = vmatprep.subr.bf16.mxu1 %v650_v4  ;;  %v678_v5 = vpop.permute.xlu1 %677 }
 0x27e   : > { %v681_v54 = vsel %vm355_vm3, %v674_v20, %v678_v5  ;;  %v683_v55 = vsel %vm355_vm3, %v678_v5, %v674_v20  ;;  %831 = vmatpush1.bf16.msra.mxu1 %v649_v46 }
 0x27f   : > { %v680_v56 = vpop.permute.xlu0 %679  ;;  %v670_v63 = vpack.c.bf16 %v668_v3, %v666_v1  ;;  %v669_v6 = vpack.c.bf16 %v667_v19, %v665_v48  ;;  %v685_v36 = vmul.f32 %v683_v55, %v1543_v52  ;;  %v686_v10 = vmul.f32 %v681_v54, %v1546_v53 }
 0x280   : > { %v682_v9 = vsel %vm355_vm3, %v676_v21, %v680_v56  ;;  %v684_v35 = vsel %vm355_vm3, %v680_v56, %v676_v21 }
 0x281   : > { %v687_v16 = vmul.f32 %v684_v35, %v1543_v52  ;;  %v688_v17 = vmul.f32 %v682_v9, %v1546_v53  ;;  %832 = vmatprep.subr.bf16.mxu1 %v670_v63  ;;  %v698_v20 = vpop.permute.xlu1 %697 }
 0x282   : > { %v701_v30 = vsel %vm387_vm4, %v694_v22, %v698_v20  ;;  %v703_v37 = vsel %vm387_vm4, %v698_v20, %v694_v22  ;;  %833 = vmatpush1.bf16.msra.mxu1 %v669_v6 }
 0x283   : > { %v700_v38 = vpop.permute.xlu0 %699  ;;  %v690_v39 = vpack.c.bf16 %v688_v17, %v686_v10  ;;  %v689_v21 = vpack.c.bf16 %v687_v16, %v685_v36  ;;  %v705_v53 = vmul.f32 %v703_v37, %v1565_v11  ;;  %v706_v41 = vmul.f32 %v701_v30, %v1568_v15 }
 0x284   : > { %v702_v40 = vsel %vm387_vm4, %v696_v23, %v700_v38  ;;  %v704_v52 = vsel %vm387_vm4, %v700_v38, %v696_v23 }
 0x285   : > { %v707_v42 = vmul.f32 %v704_v52, %v1565_v11  ;;  %v708_v13 = vmul.f32 %v702_v40, %v1568_v15  ;;  %834 = vmatprep.subr.bf16.mxu1 %v690_v39  ;;  %v778_v22 = vpop.permute.xlu1 %777  ;;  %v991_v39 = vcombine.low %v1747_v62, %v1747_v62 }
 0x286   : > { %835 = vmatpush1.bf16.msra.mxu1 %v689_v21 }
 0x287   : > { %v780_v14 = vpop.permute.xlu0 %779  ;;  %v710_v43 = vpack.c.bf16 %v708_v13, %v706_v41  ;;  %v709_v44 = vpack.c.bf16 %v707_v42, %v705_v53 }
 0x289   : > { %836 = vmatprep.subr.bf16.mxu1 %v710_v43  ;;  %v722_v45 = vpop.permute.xlu1 %721 }
 0x28a   : > { %v725_v23 = vsel %vm423_vm5, %v1763_v24, %v722_v45  ;;  %v727_v0 = vsel %vm423_vm5, %v722_v45, %v1763_v24  ;;  %837 = vmatpush1.bf16.msra.mxu1 %v709_v44 }
 0x28b   : > { %v724_v11 = vpop.permute.xlu0 %723  ;;  %838 = vmatprep.subr.bf16.mxu1 %v714_v61  ;;  %v729_v4 = vmul.f32 %v725_v23, %v1587_v33  ;;  %v730_v46 = vmul.f32 %v727_v0, %v1590_v34 }
 0x28c   : > { %v726_v15 = vsel %vm423_vm5, %v1765_v25, %v724_v11  ;;  %v728_v2 = vsel %vm423_vm5, %v724_v11, %v1765_v25 }
 0x28d   : > { %v731_v24 = vmul.f32 %v726_v15, %v1587_v33  ;;  %v732_v47 = vmul.f32 %v728_v2, %v1590_v34  ;;  %v742_v18 = vpop.permute.xlu1 %741 }
 0x28e   : > { %v745_v58 = vsel %vm455_vm6, %v1767_v26, %v742_v18  ;;  %v747_v59 = vsel %vm455_vm6, %v742_v18, %v1767_v26  ;;  %839 = vmatpush1.bf16.msra.mxu1 %v713_v60 }
 0x28f   : > { %v744_v61 = vpop.permute.xlu0 %743  ;;  %v734_v25 = vpack.c.bf16 %v732_v47, %v730_v46  ;;  %v733_v48 = vpack.c.bf16 %v731_v24, %v729_v4  ;;  %v749_v1 = vmul.f32 %v745_v58, %v1615_v49  ;;  %v750_v19 = vmul.f32 %v747_v59, %v1618_v50 }
 0x290   : > { %v746_v33 = vsel %vm455_vm6, %v1769_v27, %v744_v61  ;;  %v748_v34 = vsel %vm455_vm6, %v744_v61, %v1769_v27 }
 0x291   : > { %v751_v26 = vmul.f32 %v746_v33, %v1615_v49  ;;  %v752_v51 = vmul.f32 %v748_v34, %v1618_v50  ;;  %v762_v57 = vpop.permute.xlu1 %761  ;;  %840 = vmatprep.subr.bf16.mxu1 %v734_v25 }
 0x292   : > { %v765_v60 = vsel %vm487_vm7, %v1771_v28, %v762_v57  ;;  %v767_v3 = vsel %vm487_vm7, %v762_v57, %v1771_v28  ;;  %841 = vmatpush1.bf16.msra.mxu1 %v733_v48 }
 0x293   : > { %v764_v27 = vpop.permute.xlu0 %763  ;;  %v754_v5 = vpack.c.bf16 %v752_v51, %v750_v19  ;;  %v753_v54 = vpack.c.bf16 %v751_v26, %v749_v1  ;;  %v769_v55 = vmul.f32 %v765_v60, %v1637_v7  ;;  %v770_v56 = vmul.f32 %v767_v3, %v1640_v8 }
 0x294   : > { %v766_v49 = vsel %vm487_vm7, %v1773_v29, %v764_v27  ;;  %v768_v50 = vsel %vm487_vm7, %v764_v27, %v1773_v29 }
 0x295   : > { %v771_v63 = vmul.f32 %v766_v49, %v1637_v7  ;;  %v772_v28 = vmul.f32 %v768_v50, %v1640_v8  ;;  %v782_v6 = vpop.permute.xlu1 %781  ;;  %842 = vmatprep.subr.bf16.mxu1 %v754_v5 }
 0x296   : > { %v785_v9 = vsel %vm519_vm8, %v778_v22, %v782_v6  ;;  %v787_v35 = vsel %vm519_vm8, %v782_v6, %v778_v22  ;;  %843 = vmatpush1.bf16.msra.mxu1 %v753_v54 }
 0x297   : > { %v784_v36 = vpop.permute.xlu0 %783  ;;  %v774_v10 = vpack.c.bf16 %v772_v28, %v770_v56  ;;  %v773_v29 = vpack.c.bf16 %v771_v63, %v769_v55  ;;  %v789_v8 = vmul.f32 %v785_v9, %v1659_v31  ;;  %v790_v17 = vmul.f32 %v787_v35, %v1662_v32 }
 0x298   : > { %v786_v16 = vsel %vm519_vm8, %v780_v14, %v784_v36  ;;  %v788_v7 = vsel %vm519_vm8, %v784_v36, %v780_v14 }
 0x299   : > { %v791_v20 = vmul.f32 %v786_v16, %v1659_v31  ;;  %v792_v30 = vmul.f32 %v788_v7, %v1662_v32  ;;  %844 = vmatprep.subr.bf16.mxu1 %v774_v10 }
 0x29a   : > { %845 = vmatpush1.bf16.msra.mxu1 %v773_v29 }
 0x29b   : > { %v794_v37 = vpack.c.bf16 %v792_v30, %v790_v17  ;;  %v793_v38 = vpack.c.bf16 %v791_v20, %v789_v8 }
 0x29d   : > { %846 = vmatprep.subr.bf16.mxu1 %v794_v37 }
 0x29e   : > { %847 = vmatpush1.bf16.msra.mxu1 %v793_v38 }
 0x2a1   : > { %863 = vmatmul.mubr.bf16.vlgmr.msra.gmra.mrb[0].mxu1 %v991_v39 }
 0x2a6   : > { %v819_v12 = vpop.permute.xlu1 %818 }
 0x374   : > { %v864_v21 = vpop.f32.mrb[0].mxu1 }
 0x375   : > { %v865_v40 = vadd.f32 %v864_v21, %v819_v12  ;;  %v866_v52 = vpop.f32.mrb[1].mxu1 }
 0x376   : > { %v867_v31 = vadd.f32 %v866_v52, %v819_v12  ;;  %v868_v32 = vpop.f32.mrb[2].mxu1 }
 0x377   : > { %v871_v53 = vmax.f32 %v865_v40, 0.0  ;;  %v869_v41 = vpop.f32.mrb[3].mxu1 }
 0x378   : > { %v872_v42 = vmax.f32 %v867_v31, 0.0 }
 0x379   : > { %873 = vst [vmem:[%s257_s10] sm:$0xff] %v871_v53 }
 0x37a   : > { %874 = vst [vmem:[%s257_s10 + $0x8] sm:$0xff] %v872_v42 }
 0x37b   : > { %1149 = shalt.err (!%p1146_p7)
}
 0x37c   : > { %s1150_s23 = scalar_lea.hbm %s1896_s28, 256  ;;  %s1154_s14 = scalar_lea.hbm %s1945_s5, 512 }
 0x37d   : > { %p1151_p9 = scmp.ne.s32.totalorder %s1896_s28, %s1150_s23  ;;  %p1155_p5 = scmp.lt.u32.totalorder %s1896_s28, %s1945_s5 }
 0x37e   : > { %p1156_p1 = scmp.lt.u32.totalorder %s1154_s14, %s1150_s23  ;;  %p1158_p4 = scmp.lt.u32.totalorder %s1150_s23, %s1896_s28 }
 0x37f   : > { %p1152_p2 = pnand %p1151_p9, %p1345_p12 }
 0x380   : > { %p1157_p11 = por %p1156_p1, %p1155_p5 }
 0x381   : > { %p1153_p0 = pneg %p1152_p2 }
 0x382   : > { %p1159_p6 = por %p1158_p4, %p1157_p11 }
 0x384   : > { %p1160_p8 = pnand %p1159_p6, %p1153_p0 }
 0x386   : > { %1163 = shalt.err (!%p1160_p8)
}
 0x387   : > { %1007 = dma.vmem_to_hbm [thread:$0]  (%p1345_p12), %s1898_s29, 256, %s1896_s28, %s876_s22  }
 0x388 PF: > { %s902_s15 = sand.u32 1, %s1194_s18   ;;  %p1960_p10 = scmp.ne.s32.totalorder %s1950_s25, 0 }
 0x389   : > { %p1961_p13 = scmp.ge.s32.totalorder %s1206_s21, 2  ;;  %s903_s10 = scalar_lea.sflag [#allocation5], %s902_s15 }
 0x38b   : > { %p1018_p3 = pnand %p1961_p13, %p1960_p10 }
 0x38d   : > { %1189 = dma.done.wait (!%p1018_p3), %s903_s10, 256  }
 0x38e   : > { %1191 = vsyncadd (!%p1018_p3), %s903_s10, 4294967040  ;;  %p19_p7 = scmp.ge.s32.totalorder %s1310_s30, 4   ;;  %s1962_s18 = smov %s1198_s19 }
 0x38f   : > { %s1963_s19 = smov %s1202_s20  ;;  %s1964_s20 = smov %s1341_s8 }
 0x390   : > { %s1965_s21 = smov %s1310_s30  ;;  %21 = sbr.rel (!%p19_p7) target bundleno = 6 (0x6), region = 96 }
 0x397   :  { %908 = vsyncpa [#allocation4], 1 }
 0x398   :  { %910 = vsyncpa [#allocation4 + $0x1], 1 }
 0x399   :  { %911 = vsyncpa [#allocation7], 1 }
 0x39a   :  { %912 = vsyncpa [#allocation5], 1 }
 0x39b   :  { %914 = vsyncpa [#allocation5 + $0x1], 1 }

</bundles_post_ra>
